<compile_context>
chip_gen: v7x
topology: tpu7x:2x2x1
jax: 0.10.0
libtpu: 0.0.40
codegen_flags: <defaults>
</compile_context>

<pallas_src>
from functools import partial

import jax
import jax.numpy as jnp
import numpy as np
from jax.experimental import pallas as pl
from jax.experimental.pallas import tpu as pltpu

IN_DIM = 10
HID_DIM = 10
OUT_DIM = 5


def toy_split_kernel(x_ref, w1_ref, b1_ref, w2_ref, b2_ref, o_ref):
    # One batch tile per grid step; both layers + ReLU fused, f32 accumulation.
    x = x_ref[...]                                               # [tile, IN]
    h = jnp.dot(x, w1_ref[...],
                preferred_element_type=jnp.float32) + b1_ref[...]
    h = jnp.maximum(h, 0.0)                                      # ReLU
    y = jnp.dot(h, w2_ref[...],
                preferred_element_type=jnp.float32) + b2_ref[...]
    o_ref[...] = y.astype(o_ref.dtype)                           # [tile, OUT]


def _round_up(n, m):
    return (n + m - 1) // m * m


@partial(jax.jit, static_argnames=("tile_rows",))
def toy_model_split_forward(x, w1, b1, w2, b2, *, tile_rows=1024):
    """Fused Linear(10->10) + ReLU + Linear(10->5) over the batch.

    Tiling policy (all static, derived from x.shape at trace time):
      * B small  -> a single grid step (fixed dispatch dominates anyway).
      * B >= ~1k -> at least 4 grid steps with tiles in [256, tile_rows] rows,
                    rebalanced so tail padding is minimal, letting BlockSpec
                    double-buffering overlap the HBM streams with compute.
    VMEM use is tiny (a few hundred KB/tile), well under every generation's
    default scoped limit, so no vmem_limit_bytes override is needed.
    """
    B, in_dim = x.shape
    assert in_dim == IN_DIM

    # --- choose the batch tile ---
    tile = min(_round_up(B, 8), _round_up(tile_rows, 8))
    if B >= 4 * 256:
        # Large enough that multi-step pipelining pays off: aim for >=4 steps.
        tile = min(tile, max(256, _round_up(pl.cdiv(B, 4), 8)))
    # Rebalance: with the chunk count fixed, pick the smallest 8-aligned tile
    # that still covers B, minimizing tail padding (pure overhead when
    # memory-bound).
    n_chunks = pl.cdiv(B, tile)
    tile = _round_up(pl.cdiv(B, n_chunks), 8)
    Bp = n_chunks * tile

    if Bp != B:
        # Tail-only pad; fused under this jit, padded rows are dropped below.
        x = jnp.pad(x, ((0, Bp - B), (0, 0)))

    out = pl.pallas_call(
        toy_split_kernel,
        out_shape=jax.ShapeDtypeStruct((Bp, OUT_DIM), x.dtype),
        grid_spec=pltpu.PrefetchScalarGridSpec(
            num_scalar_prefetch=0,
            grid=(n_chunks,),
            in_specs=[
                pl.BlockSpec((tile, IN_DIM),     lambda i: (i, 0)),  # x tile
                pl.BlockSpec((IN_DIM, HID_DIM),  lambda i: (0, 0)),  # W1
                pl.BlockSpec((1, HID_DIM),       lambda i: (0, 0)),  # b1
                pl.BlockSpec((HID_DIM, OUT_DIM), lambda i: (0, 0)),  # W2
                pl.BlockSpec((1, OUT_DIM),       lambda i: (0, 0)),  # b2
            ],
            out_specs=pl.BlockSpec((tile, OUT_DIM), lambda i: (i, 0)),
        ),
        compiler_params=pltpu.CompilerParams(
            # Batch tiles are independent; "parallel" is safe everywhere and
            # lets megacore sharding kick in where available.
            dimension_semantics=("parallel",),
        ),
    )(x, w1, b1, w2, b2)

    return out[:B] if Bp != B else out


def init_params(key):
    # Deterministic init mimicking nn.Linear's U(-1/sqrt(fan_in), 1/sqrt(fan_in)).
    k1, k2, k3, k4 = jax.random.split(key, 4)
    bound1 = 1.0 / np.sqrt(IN_DIM)
    bound2 = 1.0 / np.sqrt(HID_DIM)
    w1 = jax.random.uniform(k1, (IN_DIM, HID_DIM), jnp.float32, -bound1, bound1)
    b1 = jax.random.uniform(k2, (1, HID_DIM), jnp.float32, -bound1, bound1)
    w2 = jax.random.uniform(k3, (HID_DIM, OUT_DIM), jnp.float32, -bound2, bound2)
    b2 = jax.random.uniform(k4, (1, OUT_DIM), jnp.float32, -bound2, bound2)
    return w1, b1, w2, b2


def _reference(x, w1, b1, w2, b2):
    return jnp.maximum(x @ w1 + b1, 0.0) @ w2 + b2


if __name__ == "__main__":
    key = jax.random.PRNGKey(0)
    kx, kx2, kp = jax.random.split(key, 3)
    w1, b1, w2, b2 = init_params(kp)

    # Torch-like example: two 20-row "splits" (batch=40); single grid step.
    batch = 40
    x = jax.random.normal(kx, (batch, IN_DIM), dtype=jnp.float32)
    out = jax.block_until_ready(toy_model_split_forward(x, w1, b1, w2, b2))
    ref = _reference(x, w1, b1, w2, b2)
    np.testing.assert_allclose(np.asarray(out), np.asarray(ref),
                               rtol=1e-5, atol=1e-5)
    assert out.shape == (batch, OUT_DIM)

    # Larger, non-multiple-of-tile batch: exercises the multi-chunk pipelined
    # path plus the (tail-only) pad-and-slice handling.
    batch2 = 2052
    x2 = jax.random.normal(kx2, (batch2, IN_DIM), dtype=jnp.float32)
    out2 = jax.block_until_ready(toy_model_split_forward(x2, w1, b1, w2, b2))
    ref2 = _reference(x2, w1, b1, w2, b2)
    np.testing.assert_allclose(np.asarray(out2), np.asarray(ref2),
                               rtol=1e-5, atol=1e-5)
    assert out2.shape == (batch2, OUT_DIM)

    print("KERNEL_OK")
</pallas_src>

<mosaic_0001>
module attributes {stable_mosaic.version = 11 : i64} {
  func.func @toy_split_kernel(%arg0: i32, %arg1: memref<40x10xf32, #tpu.memory_space<vmem>>, %arg2: memref<10x10xf32, #tpu.memory_space<vmem>>, %arg3: memref<1x10xf32, #tpu.memory_space<vmem>>, %arg4: memref<10x5xf32, #tpu.memory_space<vmem>>, %arg5: memref<1x5xf32, #tpu.memory_space<vmem>>, %arg6: memref<40x5xf32, #tpu.memory_space<vmem>>) attributes {dimension_semantics = [#tpu.dimension_semantics<parallel>], iteration_bounds = array<i64: 1>, scalar_prefetch = 0 : i64, scratch_operands = 0 : i64, tpu.core_type = #tpu.core_type<tc>, window_params = [{transform_indices = @transform_0, window_bounds = array<i64: 40, 10>}, {pipeline_mode = #tpu.pipeline_mode<synchronous>, transform_indices = @transform_1, window_bounds = array<i64: 10, 10>}, {pipeline_mode = #tpu.pipeline_mode<synchronous>, transform_indices = @transform_2, window_bounds = array<i64: 1, 10>}, {pipeline_mode = #tpu.pipeline_mode<synchronous>, transform_indices = @transform_3, window_bounds = array<i64: 10, 5>}, {pipeline_mode = #tpu.pipeline_mode<synchronous>, transform_indices = @transform_4, window_bounds = array<i64: 1, 5>}, {transform_indices = @transform_5, window_bounds = array<i64: 40, 5>}]} {
    %c0 = arith.constant 0 : index
    %c0_0 = arith.constant 0 : index
    %0 = vector.load %arg1[%c0, %c0_0] : memref<40x10xf32, #tpu.memory_space<vmem>>, vector<40x10xf32>
    %c0_1 = arith.constant 0 : index
    %c0_2 = arith.constant 0 : index
    %1 = vector.load %arg2[%c0_1, %c0_2] : memref<10x10xf32, #tpu.memory_space<vmem>>, vector<10x10xf32>
    %cst = arith.constant dense<0.000000e+00> : vector<40x10xf32>
    %2 = tpu.matmul %0, %1, %cst {dimension_numbers = #tpu.dot_dimension_numbers<[1], [0], [0], [1], [0, 0, 1, 1], [], []>} : vector<40x10xf32>, vector<10x10xf32>, vector<40x10xf32> -> vector<40x10xf32>
    %c0_3 = arith.constant 0 : index
    %c0_4 = arith.constant 0 : index
    %3 = vector.load %arg3[%c0_3, %c0_4] : memref<1x10xf32, #tpu.memory_space<vmem>>, vector<1x10xf32>
    %4 = vector.broadcast %3 : vector<1x10xf32> to vector<40x10xf32>
    %5 = arith.addf %2, %4 : vector<40x10xf32>
    %cst_5 = arith.constant 0.000000e+00 : f32
    %6 = vector.broadcast %cst_5 : f32 to vector<40x10xf32>
    %7 = arith.maximumf %5, %6 : vector<40x10xf32>
    %c0_6 = arith.constant 0 : index
    %c0_7 = arith.constant 0 : index
    %8 = vector.load %arg4[%c0_6, %c0_7] : memref<10x5xf32, #tpu.memory_space<vmem>>, vector<10x5xf32>
    %cst_8 = arith.constant dense<0.000000e+00> : vector<40x5xf32>
    %9 = tpu.matmul %7, %8, %cst_8 {dimension_numbers = #tpu.dot_dimension_numbers<[1], [0], [0], [1], [0, 0, 1, 1], [], []>} : vector<40x10xf32>, vector<10x5xf32>, vector<40x5xf32> -> vector<40x5xf32>
    %c0_9 = arith.constant 0 : index
    %c0_10 = arith.constant 0 : index
    %10 = vector.load %arg5[%c0_9, %c0_10] : memref<1x5xf32, #tpu.memory_space<vmem>>, vector<1x5xf32>
    %11 = vector.broadcast %10 : vector<1x5xf32> to vector<40x5xf32>
    %12 = arith.addf %9, %11 : vector<40x5xf32>
    %c0_11 = arith.constant 0 : index
    %c0_12 = arith.constant 0 : index
    %13 = vector.load %arg6[%c0_11, %c0_12] : memref<40x5xf32, #tpu.memory_space<vmem>>, vector<40x5xf32>
    tpu.vector_store %arg6[%c0_11, %c0_12], %12 {strides = array<i32>} : memref<40x5xf32, #tpu.memory_space<vmem>>, vector<40x5xf32>,
    return
  }
  func.func @transform_0(%arg0: i32) -> (i32, i32) {
    %c0_i32 = arith.constant 0 : i32
    %c0_i32_0 = arith.constant 0 : i32
    return %arg0, %c0_i32 : i32, i32
  }
  func.func @transform_1(%arg0: i32) -> (i32, i32) {
    %c0_i32 = arith.constant 0 : i32
    %c0_i32_0 = arith.constant 0 : i32
    %c0_i32_1 = arith.constant 0 : i32
    return %c0_i32, %c0_i32_0 : i32, i32
  }
  func.func @transform_2(%arg0: i32) -> (i32, i32) {
    %c0_i32 = arith.constant 0 : i32
    %c0_i32_0 = arith.constant 0 : i32
    %c0_i32_1 = arith.constant 0 : i32
    return %c0_i32, %c0_i32_0 : i32, i32
  }
  func.func @transform_3(%arg0: i32) -> (i32, i32) {
    %c0_i32 = arith.constant 0 : i32
    %c0_i32_0 = arith.constant 0 : i32
    %c0_i32_1 = arith.constant 0 : i32
    return %c0_i32, %c0_i32_0 : i32, i32
  }
  func.func @transform_4(%arg0: i32) -> (i32, i32) {
    %c0_i32 = arith.constant 0 : i32
    %c0_i32_0 = arith.constant 0 : i32
    %c0_i32_1 = arith.constant 0 : i32
    return %c0_i32, %c0_i32_0 : i32, i32
  }
  func.func @transform_5(%arg0: i32) -> (i32, i32) {
    %c0_i32 = arith.constant 0 : i32
    %c0_i32_0 = arith.constant 0 : i32
    return %arg0, %c0_i32 : i32, i32
  }
}

</mosaic_0001>

<bundles_post_ra>
// kernel: toy_model_split_forward.1
= control target key start
LH: loop header
LB: loop body
LE: loop exit
PB: predicated region body
PF: predicated region fallthrough
CT: control target
= control target key end

     0   :  { %vm50_vm0 = vcmask 1041408   ;;  %v354_v0 = vmov 0.0|0.0   ;;  %vm355_vm1 = vmmov 1   ;;  %vm356_vm3 = vmmov 0   ;;  %s469_s1 = inlined_call_operand.vmem [shape: f32[10,10], index: 1, kind: input, shape index: {}]   ;;  %s470_s0 = inlined_call_operand.vmem [shape: f32[40,10], index: 0, kind: input, shape index: {}]   ;;  %s471_s3 = inlined_call_operand.vmem [shape: f32[10,5], index: 3, kind: input, shape index: {}]   ;;  %s472_s2 = inlined_call_operand.vmem [shape: f32[1,10], index: 2, kind: input, shape index: {}]   ;;  %s473_s4 = inlined_call_operand.vmem [shape: f32[1,5], index: 4, kind: input, shape index: {}]   ;;  %s474_s5 = inlined_call_operand.vmem [shape: f32[40,5], index: 5, kind: output, shape index: {}]  }
   0x1   :  { %342 = vmatprep.subr.bf16.mxu0 %v354_v0  ;;  %v25_v1 = vld [vmem:[%s469_s1] sm:$0xff]  ;;  %v26_v2 = vld [vmem:[%s469_s1 + $0x8] sm:$0x3]  ;;  %vm394_vm2 = vmpackc.low %vm50_vm0, %vm355_vm1  ;;  %346 = vmatprep.subr.bf16.mxu1 %v354_v0  ;;  %v357_v5 = vmov 0.0   ;;  %vm34_vm4 = vcmask 80896   ;;  %vm266_vm5 = vcmask 39936  }
   0x2   :  { %v343_v4 = vpack.c.bf16 %v26_v2, %v25_v1  ;;  %308 = vmatprep.mubr.msk.f32.mxu0 %vm356_vm3, %v357_v5  ;;  %327 = vmatprep.mubr.msk.f32.mxu1 %vm356_vm3, %v357_v5  ;;  %v20_v6 = vld [vmem:[%s470_s0] sm:$0xff]  ;;  %v21_v7 = vld [vmem:[%s470_s0 + $0x8] sm:$0xff]  ;;  %v22_v8 = vld [vmem:[%s470_s0 + $0x10] sm:$0xff] }
   0x3   :  { %v23_v9 = vld [vmem:[%s470_s0 + $0x18] sm:$0xff]  ;;  %v24_v10 = vld [vmem:[%s470_s0 + $0x20] sm:$0xff]  ;;  %v150_v12 = vld [vmem:[%s471_s3 + $0x8] sm:$0x3] }
   0x4   :  { %345 = vmatpush3.bf16.msk.msra.mxu0 %vm394_vm2, %v343_v4  ;;  %v149_v11 = vld [vmem:[%s471_s3] sm:$0xff] }
   0x5   :  { %v347_v13 = vpack.c.bf16 %v150_v12, %v149_v11  ;;  %v276_v14 = vld [vmem:[%s472_s2] ss:$0 sm:$0xff] }
   0x6   :  { %v283_v35 = vld [vmem:[%s473_s4] ss:$0 sm:$0xff] }
   0x7   :  { %309 = vmatmul.mubr.msk.f32.vlgmr.msra.gmra.mrb[0].mxu0 %vm34_vm4, %v20_v6  ;;  %349 = vmatpush3.bf16.msk.msra.mxu1 %vm394_vm2, %v347_v13 }
   0x8   :  { %311 = vmatprep.mubr.msk.f32.mxu0 %vm356_vm3, %v357_v5 }
   0xb   :  { %312 = vmatmul.mubr.msk.f32.gmra.mrb[2].mxu0 %vm34_vm4, %v21_v7 }
   0xc   :  { %314 = vmatprep.mubr.msk.f32.mxu0 %vm356_vm3, %v357_v5 }
   0xf   :  { %315 = vmatmul.mubr.msk.f32.gmra.mrb[4].mxu0 %vm34_vm4, %v22_v8 }
  0x10   :  { %317 = vmatprep.mubr.msk.f32.mxu0 %vm356_vm3, %v357_v5 }
  0x13   :  { %318 = vmatmul.mubr.msk.f32.gmra.mrb[6].mxu0 %vm34_vm4, %v23_v9 }
  0x14   :  { %320 = vmatprep.mubr.msk.f32.mxu0 %vm356_vm3, %v357_v5 }
  0x17   :  { %321 = vmatmul.mubr.msk.f32.gmra.mrb[8].mxu0 %vm34_vm4, %v24_v10 }
  0xda   :  { %v120_v15 = vpop.f32.mrb[0].mxu0 }
  0xdb   :  { %v121_v16 = vadd.f32 %v276_v14, %v120_v15  ;;  %v310_v17 = vpop.f32.mrb[1].mxu0 }
  0xdd   :  { %v144_v18 = vmax.f32 %v121_v16, 0.0 }
  0xde   :  { %v125_v19 = vpop.f32.mrb[2].mxu0 }
  0xdf   :  { %v126_v20 = vadd.f32 %v276_v14, %v125_v19  ;;  %v313_v21 = vpop.f32.mrb[3].mxu0  ;;  %328 = vmatmul.mubr.msk.f32.vlgmr.msra.gmra.mrb[0].mxu1 %vm34_vm4, %v144_v18 }
  0xe0   :  { %330 = vmatprep.mubr.msk.f32.mxu1 %vm356_vm3, %v357_v5 }
  0xe1   :  { %v145_v22 = vmax.f32 %v126_v20, 0.0 }
  0xe2   :  { %v130_v23 = vpop.f32.mrb[4].mxu0 }
  0xe3   :  { %v131_v24 = vadd.f32 %v276_v14, %v130_v23  ;;  %v316_v25 = vpop.f32.mrb[5].mxu0  ;;  %331 = vmatmul.mubr.msk.f32.gmra.mrb[2].mxu1 %vm34_vm4, %v145_v22 }
  0xe4   :  { %333 = vmatprep.mubr.msk.f32.mxu1 %vm356_vm3, %v357_v5 }
  0xe5   :  { %v146_v26 = vmax.f32 %v131_v24, 0.0 }
  0xe6   :  { %v135_v27 = vpop.f32.mrb[6].mxu0 }
  0xe7   :  { %v136_v28 = vadd.f32 %v276_v14, %v135_v27  ;;  %v319_v29 = vpop.f32.mrb[7].mxu0  ;;  %334 = vmatmul.mubr.msk.f32.gmra.mrb[4].mxu1 %vm34_vm4, %v146_v26 }
  0xe8   :  { %336 = vmatprep.mubr.msk.f32.mxu1 %vm356_vm3, %v357_v5 }
  0xe9   :  { %v147_v30 = vmax.f32 %v136_v28, 0.0 }
  0xea   :  { %v140_v31 = vpop.f32.mrb[8].mxu0 }
  0xeb   :  { %v141_v32 = vadd.f32 %v276_v14, %v140_v31  ;;  %v322_v33 = vpop.f32.mrb[9].mxu0  ;;  %337 = vmatmul.mubr.msk.f32.gmra.mrb[6].mxu1 %vm34_vm4, %v147_v30 }
  0xec   :  { %339 = vmatprep.mubr.msk.f32.mxu1 %vm356_vm3, %v357_v5 }
  0xed   :  { %v148_v34 = vmax.f32 %v141_v32, 0.0 }
  0xef   :  { %340 = vmatmul.mubr.msk.f32.gmra.mrb[8].mxu1 %vm34_vm4, %v148_v34 }
 0x1b2   :  { %v242_v36 = vpop.f32.mrb[0].mxu1 }
 0x1b3   :  { %v243_v37 = vadd.f32 %v283_v35, %v242_v36  ;;  %v329_v38 = vpop.f32.mrb[1].mxu1 }
 0x1b5   :  { %267 = vst.msk [vmem:[%s474_s5] sm:$0xff] %vm266_vm5, %v243_v37 }
 0x1b6   :  { %v247_v39 = vpop.f32.mrb[2].mxu1 }
 0x1b7   :  { %v248_v40 = vadd.f32 %v283_v35, %v247_v39  ;;  %v332_v41 = vpop.f32.mrb[3].mxu1 }
 0x1b9   :  { %268 = vst.msk [vmem:[%s474_s5 + $0x8] sm:$0xff] %vm266_vm5, %v248_v40 }
 0x1ba   :  { %v252_v42 = vpop.f32.mrb[4].mxu1 }
 0x1bb   :  { %v253_v43 = vadd.f32 %v283_v35, %v252_v42  ;;  %v335_v44 = vpop.f32.mrb[5].mxu1 }
 0x1bd   :  { %269 = vst.msk [vmem:[%s474_s5 + $0x10] sm:$0xff] %vm266_vm5, %v253_v43 }
 0x1be   :  { %v257_v45 = vpop.f32.mrb[6].mxu1 }
 0x1bf   :  { %v258_v46 = vadd.f32 %v283_v35, %v257_v45  ;;  %v338_v47 = vpop.f32.mrb[7].mxu1 }
 0x1c1   :  { %270 = vst.msk [vmem:[%s474_s5 + $0x18] sm:$0xff] %vm266_vm5, %v258_v46 }
 0x1c2   :  { %v262_v48 = vpop.f32.mrb[8].mxu1 }
 0x1c3   :  { %v263_v49 = vadd.f32 %v283_v35, %v262_v48  ;;  %v341_v50 = vpop.f32.mrb[9].mxu1 }
 0x1c5   :  { %271 = vst.msk [vmem:[%s474_s5 + $0x20] sm:$0xff] %vm266_vm5, %v263_v49 }

</bundles_post_ra>
